<compile_context>
chip_gen: v7x
topology: tpu7x:2x2x1
jax: 0.10.0
libtpu: 0.0.40
codegen_flags: <defaults>
</compile_context>

<pallas_src>
import math

import jax
import jax.numpy as jnp
from jax import lax
from jax.experimental import pallas as pl
from jax.experimental.pallas import tpu as pltpu

BN_EPS = 1e-5
_INV_SQRT2 = 1.0 / math.sqrt(2.0)
_MAX_TILE_BYTES = 2 * 1024 * 1024  # per x-tile; double-buffered in+out stays <~8 MiB


def _round_up(a, b):
    return (a + b - 1) // b * b


def _stats_kernel(x_ref, w_ref, sum_ref, sumsq_ref):
    # x_ref: (C, T) lane-dense pixel tile; w_ref: (C_out, C_in)
    # Accumulate global per-channel sum / sumsq of y = W @ x across the grid.
    @pl.when(jnp.logical_and(pl.program_id(0) == 0, pl.program_id(1) == 0))
    def _():
        sum_ref[...] = jnp.zeros_like(sum_ref)
        sumsq_ref[...] = jnp.zeros_like(sumsq_ref)

    y = lax.dot_general(
        w_ref[...], x_ref[...],
        dimension_numbers=(((1,), (0,)), ((), ())),
        preferred_element_type=jnp.float32,
    )  # (C, T)
    sum_ref[...] += jnp.sum(y, axis=1, keepdims=True)
    sumsq_ref[...] += jnp.sum(y * y, axis=1, keepdims=True)


def _apply_kernel(x_ref, w_ref, shift_ref, o_ref):
    # Fused (BN-scaled) 1x1 conv + per-channel shift + exact GELU.
    z = lax.dot_general(
        w_ref[...], x_ref[...],
        dimension_numbers=(((1,), (0,)), ((), ())),
        preferred_element_type=jnp.float32,
    ) + shift_ref[...]                                   # (C, T) + (C, 1)
    o_ref[...] = 0.5 * z * (1.0 + lax.erf(z * _INV_SQRT2))


def channel_fusion_forward(x_nchw, conv_w, conv_b, bn_gamma, bn_beta):
    """x_nchw: (N, C, H, W) f32; conv_w: (C, C, 1, 1); conv_b/bn_*: (C,)."""
    n, c, h, w = x_nchw.shape
    hw = h * w
    m = n * hw  # true pixel count for BN statistics

    # NCHW -> (N, C, HW): contiguous reshape, no transpose, HW is lane axis.
    x3 = x_nchw.reshape(n, c, hw).astype(jnp.float32)

    # Tile the pixel (lane) axis: multiple of 128, capped at ~2 MiB per tile.
    t_cap = max(128, (_MAX_TILE_BYTES // (c * 4)) // 128 * 128)
    hw_lane = _round_up(hw, 128)
    tile = hw_lane if hw_lane <= t_cap else t_cap
    hw_pad = _round_up(hw, tile)
    if hw_pad != hw:
        # zero padding contributes 0 to sum / sumsq (no bias in the stats pass)
        x3 = jnp.pad(x3, ((0, 0), (0, 0), (0, hw_pad - hw)))
    n_tiles = hw_pad // tile

    w2 = conv_w[:, :, 0, 0].astype(jnp.float32)  # (C_out, C_in)
    # Conv bias is cancelled by train-mode BN mean subtraction -> not applied.
    del conv_b

    x_spec = pl.BlockSpec((None, c, tile), lambda i, j: (i, 0, j))
    w_spec = pl.BlockSpec((c, c), lambda i, j: (0, 0))
    vec_spec = pl.BlockSpec((c, 1), lambda i, j: (0, 0))

    # ---- Pass 1: global per-channel sufficient statistics of y = W @ x ----
    sum_y, sumsq_y = pl.pallas_call(
        _stats_kernel,
        out_shape=(jax.ShapeDtypeStruct((c, 1), jnp.float32),
                   jax.ShapeDtypeStruct((c, 1), jnp.float32)),
        grid=(n, n_tiles),
        in_specs=[x_spec, w_spec],
        out_specs=(vec_spec, vec_spec),
        compiler_params=pltpu.CompilerParams(
            dimension_semantics=("arbitrary", "arbitrary")),
    )(x3, w2)

    # ---- Tiny glue: fold BN scale into the conv weight, compute shift ----
    mean = sum_y[:, 0] / m
    var = jnp.maximum(sumsq_y[:, 0] / m - mean * mean, 0.0)
    inv_std = lax.rsqrt(var + BN_EPS)
    scale = bn_gamma.astype(jnp.float32) * inv_std
    w_fused = scale[:, None] * w2                              # (C_out, C_in)
    shift = (bn_beta.astype(jnp.float32) - scale * mean).reshape(c, 1)

    # ---- Pass 2: fused conv + BN affine + GELU, lane-dense output tiles ----
    out3 = pl.pallas_call(
        _apply_kernel,
        out_shape=jax.ShapeDtypeStruct((n, c, hw_pad), jnp.float32),
        grid=(n, n_tiles),
        in_specs=[x_spec, w_spec, vec_spec],
        out_specs=pl.BlockSpec((None, c, tile), lambda i, j: (i, 0, j)),
        compiler_params=pltpu.CompilerParams(
            dimension_semantics=("parallel", "parallel")),
    )(x3, w_fused, shift)

    if hw_pad != hw:
        out3 = out3[:, :, :hw]
    return out3.reshape(n, c, h, w)


def _reference(x, conv_w, conv_b, gamma, beta):
    # Plain-JAX reference of Conv2d(1x1) -> BatchNorm2d(train) -> exact GELU.
    w2 = conv_w[:, :, 0, 0]
    y = jnp.einsum("oc,nchw->nohw", w2, x) + conv_b[None, :, None, None]
    mean = y.mean(axis=(0, 2, 3), keepdims=True)
    var = y.var(axis=(0, 2, 3), keepdims=True)  # biased, as PyTorch BN train
    yh = (y - mean) * lax.rsqrt(var + BN_EPS)
    z = gamma[None, :, None, None] * yh + beta[None, :, None, None]
    return 0.5 * z * (1.0 + lax.erf(z * _INV_SQRT2))


if __name__ == "__main__":
    key = jax.random.PRNGKey(0)
    k_x, k_w, k_b = jax.random.split(key, 3)

    N, C, H, W = 2, 4, 16, 16  # in_nc = 4

    x = jax.random.normal(k_x, (N, C, H, W), dtype=jnp.float32)

    # Deterministic parameter init (PyTorch-default shapes/scales):
    fan_in = C * 1 * 1
    bound = 1.0 / math.sqrt(fan_in)
    conv_w = jax.random.uniform(k_w, (C, C, 1, 1), jnp.float32, -bound, bound)
    conv_b = jax.random.uniform(k_b, (C,), jnp.float32, -bound, bound)
    bn_gamma = jnp.ones((C,), jnp.float32)
    bn_beta = jnp.zeros((C,), jnp.float32)

    out = channel_fusion_forward(x, conv_w, conv_b, bn_gamma, bn_beta)
    out = jax.block_until_ready(out)

    assert out.shape == (N, C, H, W)
    assert bool(jnp.all(jnp.isfinite(out)))

    ref = _reference(x, conv_w, conv_b, bn_gamma, bn_beta)
    assert jnp.allclose(out, ref, rtol=1e-3, atol=1e-3), float(
        jnp.max(jnp.abs(out - ref)))

    print("KERNEL_OK")
</pallas_src>

<mosaic_0001>
module attributes {stable_mosaic.version = 11 : i64} {
  func.func @_stats_kernel(%arg0: i32, %arg1: i32, %arg2: memref<1x4x256xf32, #tpu.memory_space<vmem>>, %arg3: memref<4x4xf32, #tpu.memory_space<vmem>>, %arg4: memref<4x1xf32, #tpu.memory_space<vmem>>, %arg5: memref<4x1xf32, #tpu.memory_space<vmem>>) attributes {dimension_semantics = [#tpu.dimension_semantics<arbitrary>, #tpu.dimension_semantics<arbitrary>], iteration_bounds = array<i64: 2, 1>, scalar_prefetch = 0 : i64, scratch_operands = 0 : i64, tpu.core_type = #tpu.core_type<tc>, window_params = [{transform_indices = @transform_0, window_bounds = array<i64: 1, 4, 256>}, {pipeline_mode = #tpu.pipeline_mode<synchronous>, transform_indices = @transform_1, window_bounds = array<i64: 4, 4>}, {pipeline_mode = #tpu.pipeline_mode<synchronous>, transform_indices = @transform_2, window_bounds = array<i64: 4, 1>}, {pipeline_mode = #tpu.pipeline_mode<synchronous>, transform_indices = @transform_3, window_bounds = array<i64: 4, 1>}]} {
    %c0_i32 = arith.constant 0 : i32
    %0 = arith.cmpi eq, %arg0, %c0_i32 : i32
    %c0_i32_0 = arith.constant 0 : i32
    %1 = arith.cmpi eq, %arg1, %c0_i32_0 : i32
    %2 = arith.andi %0, %1 : i1
    %3 = arith.extui %2 : i1 to i32
    %c0_i32_1 = arith.constant 0 : i32
    %4 = arith.cmpi ne, %3, %c0_i32_1 : i32
    scf.if %4 {
      %cst_16 = arith.constant 0.000000e+00 : f32
      %20 = vector.broadcast %cst_16 : f32 to vector<4x1xf32>
      %c0_17 = arith.constant 0 : index
      %c0_18 = arith.constant 0 : index
      %21 = vector.load %arg4[%c0_17, %c0_18] : memref<4x1xf32, #tpu.memory_space<vmem>>, vector<4x1xf32>
      tpu.vector_store %arg4[%c0_17, %c0_18], %20 {strides = array<i32>} : memref<4x1xf32, #tpu.memory_space<vmem>>, vector<4x1xf32>,
      %cst_19 = arith.constant 0.000000e+00 : f32
      %22 = vector.broadcast %cst_19 : f32 to vector<4x1xf32>
      %c0_20 = arith.constant 0 : index
      %c0_21 = arith.constant 0 : index
      %23 = vector.load %arg5[%c0_20, %c0_21] : memref<4x1xf32, #tpu.memory_space<vmem>>, vector<4x1xf32>
      tpu.vector_store %arg5[%c0_20, %c0_21], %22 {strides = array<i32>} : memref<4x1xf32, #tpu.memory_space<vmem>>, vector<4x1xf32>,
    } else {
    }
    %c0 = arith.constant 0 : index
    %c0_2 = arith.constant 0 : index
    %5 = vector.load %arg3[%c0, %c0_2] : memref<4x4xf32, #tpu.memory_space<vmem>>, vector<4x4xf32>
    %c0_3 = arith.constant 0 : index
    %c0_4 = arith.constant 0 : index
    %c0_5 = arith.constant 0 : index
    %6 = vector.load %arg2[%c0_3, %c0_4, %c0_5] : memref<1x4x256xf32, #tpu.memory_space<vmem>>, vector<1x4x256xf32>
    %7 = vector.shape_cast %6 : vector<1x4x256xf32> to vector<4x256xf32>
    %cst = arith.constant dense<0.000000e+00> : vector<4x256xf32>
    %8 = tpu.matmul %5, %7, %cst {dimension_numbers = #tpu.dot_dimension_numbers<[1], [0], [0], [1], [0, 0, 1, 1], [], []>} : vector<4x4xf32>, vector<4x256xf32>, vector<4x256xf32> -> vector<4x256xf32>
    %c0_6 = arith.constant 0 : index
    %c0_7 = arith.constant 0 : index
    %9 = vector.load %arg4[%c0_6, %c0_7] : memref<4x1xf32, #tpu.memory_space<vmem>>, vector<4x1xf32>
    %cst_8 = arith.constant dense<0.000000e+00> : vector<4xf32>
    %10 = vector.multi_reduction <add>, %8, %cst_8 [1] : vector<4x256xf32> to vector<4xf32>
    %11 = vector.shape_cast %10 : vector<4xf32> to vector<4x1xf32>
    %12 = arith.addf %9, %11 : vector<4x1xf32>
    %c0_9 = arith.constant 0 : index
    %c0_10 = arith.constant 0 : index
    %13 = vector.load %arg4[%c0_9, %c0_10] : memref<4x1xf32, #tpu.memory_space<vmem>>, vector<4x1xf32>
    tpu.vector_store %arg4[%c0_9, %c0_10], %12 {strides = array<i32>} : memref<4x1xf32, #tpu.memory_space<vmem>>, vector<4x1xf32>,
    %c0_11 = arith.constant 0 : index
    %c0_12 = arith.constant 0 : index
    %14 = vector.load %arg5[%c0_11, %c0_12] : memref<4x1xf32, #tpu.memory_space<vmem>>, vector<4x1xf32>
    %15 = arith.mulf %8, %8 : vector<4x256xf32>
    %cst_13 = arith.constant dense<0.000000e+00> : vector<4xf32>
    %16 = vector.multi_reduction <add>, %15, %cst_13 [1] : vector<4x256xf32> to vector<4xf32>
    %17 = vector.shape_cast %16 : vector<4xf32> to vector<4x1xf32>
    %18 = arith.addf %14, %17 : vector<4x1xf32>
    %c0_14 = arith.constant 0 : index
    %c0_15 = arith.constant 0 : index
    %19 = vector.load %arg5[%c0_14, %c0_15] : memref<4x1xf32, #tpu.memory_space<vmem>>, vector<4x1xf32>
    tpu.vector_store %arg5[%c0_14, %c0_15], %18 {strides = array<i32>} : memref<4x1xf32, #tpu.memory_space<vmem>>, vector<4x1xf32>,
    return
  }
  func.func @transform_0(%arg0: i32, %arg1: i32) -> (i32, i32, i32) {
    %c0_i32 = arith.constant 0 : i32
    %c0_i32_0 = arith.constant 0 : i32
    return %arg0, %c0_i32, %arg1 : i32, i32, i32
  }
  func.func @transform_1(%arg0: i32, %arg1: i32) -> (i32, i32) {
    %c0_i32 = arith.constant 0 : i32
    %c0_i32_0 = arith.constant 0 : i32
    %c0_i32_1 = arith.constant 0 : i32
    return %c0_i32, %c0_i32_0 : i32, i32
  }
  func.func @transform_2(%arg0: i32, %arg1: i32) -> (i32, i32) {
    %c0_i32 = arith.constant 0 : i32
    %c0_i32_0 = arith.constant 0 : i32
    %c0_i32_1 = arith.constant 0 : i32
    return %c0_i32, %c0_i32_0 : i32, i32
  }
  func.func @transform_3(%arg0: i32, %arg1: i32) -> (i32, i32) {
    %c0_i32 = arith.constant 0 : i32
    %c0_i32_0 = arith.constant 0 : i32
    %c0_i32_1 = arith.constant 0 : i32
    return %c0_i32, %c0_i32_0 : i32, i32
  }
}

</mosaic_0001>

<bundles_post_ra>
// kernel: tpu_custom_call.1
= control target key start
LH: loop header
LB: loop body
LE: loop exit
PB: predicated region body
PF: predicated region fallthrough
CT: control target
= control target key end

     0   :  { %9 = vsyncpa [#allocation3], 0  ;;  %s789_s0 = inlined_call_operand.hbm [shape: f32[2,4,256], index: 0, kind: input, shape index: {}]   ;;  %s790_s1 = inlined_call_operand.hbm [shape: f32[4,4], index: 1, kind: input, shape index: {}]   ;;  %s791_s2 = inlined_call_operand.vmem [shape: f32[4,1], index: 2, kind: output, shape index: {0}]   ;;  %s792_s3 = inlined_call_operand.vmem [shape: f32[4,1], index: 3, kind: output, shape index: {1}]  }
   0x1   :  { %11 = vsyncpa [#allocation3 + $0x1], 0 }
   0x2   :  { %12 = vsyncpa [#allocation5], 0  ;;  %s606_s12 = smov 0   ;;  %s608_s13 = smov 0  }
   0x3   :  { %s610_s14 = smov 0   ;;  %s612_s15 = smov 0  }
   0x4   :  { %s614_s16 = smov 0   ;;  %s616_s17 = smov 0  }
   0x5 LB: > { %s381_s18 = sadd.s32 4294967295, %s580_s17   ;;  %p52_p0 = scmp.ne.s32.totalorder %s564_s13, %s560_s12  ;;  %s580_s17 = sphi %s616_s17, %s18_s17   ;;  %s576_s16 = sphi %s614_s16, %s811_s16   ;;  %s572_s15 = sphi %s612_s15, %s810_s15   ;;  %s568_s14 = sphi %s610_s14, %s809_s14   ;;  %s564_s13 = sphi %s608_s13, %s808_s13   ;;  %s560_s12 = sphi %s606_s12, %s807_s12  }
   0x6   : > { %p636_p1 = scmp.eq.s32.totalorder %s381_s18, 0  ;;  %p382_p2 = scmp.ge.s32.totalorder %s580_s17, 1 }
   0x7   : > { %p126_p3 = scmp.lt.s32.totalorder %s580_s17, 3  ;;  %s582_s22 = smov [#allocation4]  }
   0x8   : > { %s797_s19 = scalar_select %p636_p1, 1, 0 }
   0x9   : > { %p644_p4 = por %p636_p1, %p52_p0  ;;  %p648_p5 = pnand %p382_p2, %p126_p3 }
   0xa   : > { %s139_s23 = sshll.u32 %s582_s22, 4  ;;  %s30_s25 = sadd.s32 1, %s576_s16  ;;  %s140_s23 = int_to_ptr.vmem [resolvable:$true] %s139_s23 }
   0xb   : > { %s798_s20 = scalar_select %p644_p4, 1, 0 }
   0xc   : > { %s799_s21 = scalar_select %p648_p5, 1, 0 }
   0xd   : > { %p405_p6 = pneg %p648_p5  ;;  %s39_s26 = sadd.s32 1, %s568_s14 }
   0xe   : > { %p662_p8 = scmp.ge.s32.totalorder %s30_s25, 2  ;;  %s468_s30 = scalar_lea.hbm %s790_s1, 64 }
   0xf   : > { %p656_p7 = pnand %p405_p6, %p636_p1  ;;  %p469_p9 = scmp.ne.s32.totalorder %s790_s1, %s468_s30 }
  0x10   : > { %s801_s27 = scalar_select %p662_p8, 1, 0 }
  0x11   : > { %p470_p10 = pneg %p656_p7  ;;  %p475_p13 = scmp.lt.u32.totalorder %s468_s30, %s790_s1 }
  0x13   : > { %p471_p11 = pnand %p470_p10, %p469_p9 }
  0x15   : > { %p472_p12 = pneg %p471_p11 }
  0x17   : > { %p477_p0 = pnand %p475_p13, %p472_p12 }
  0x19   : > { %480 = shalt.err (!%p477_p0)
}
  0x1a   : > { %s481_s8 = scalar_lea.vmem %s140_s23, 64  ;;  %p489_p1 = scmp.lt.s32.totalorder %s140_s23, %s140_s23 }
  0x1b   : > { %p482_p2 = scmp.ne.s32.totalorder %s140_s23, %s481_s8  ;;  %p490_p4 = scmp.lt.s32.totalorder %s481_s8, %s481_s8 }
  0x1d   : > { %p484_p3 = pnand %p482_p2, %p470_p10  ;;  %p491_p5 = por %p490_p4, %p489_p1 }
  0x1f   : > { %p485_p6 = pneg %p484_p3 }
  0x21   : > { %p492_p8 = pnand %p491_p5, %p485_p6 }
  0x23   : > { %495 = shalt.err (!%p492_p8)
}
  0x24   : > { %408 = dma.hbm_to_vmem [thread:$0]  (!%p656_p7), %s790_s1, 64, %s140_s23, [#allocation5]  }
  0x25   : > { %p802_p9 = scmp.ne.s32.totalorder %s801_s27, 0  ;;  %p46_p1 = scmp.ne.s32.totalorder %s568_s14, %s564_s13 }
  0x26   : > { %p47_p4 = scmp.eq.s32.totalorder %s580_s17, 0  ;;  %p414_p5 = scmp.lt.s32.totalorder %s580_s17, 2 }
  0x27   : > { %s813_s25 = smov (%p802_p9, %s30_s25), 0  ;;  %s150_s12 = sand.u32 1, %s568_s14  }
  0x28   : > { %s34_s11 = ssub.s32 %s576_s16, %s813_s25  ;;  %p48_p10 = por %p47_p4, %p46_p1 }
  0x29   : > { %p37_p8 = scmp.eq.s32.totalorder %s34_s11, 0  ;;  %s397_s18 = sshll.u32 %s576_s16, 7 }
  0x2a   : > { %s385_s24 = sshll.u32 %s150_s12, 3  ;;  %s702_s23 = scalar_lea.hbm %s789_s0, %s397_s18 }
  0x2b   : > { %s697_s22 = scalar_select %p37_p8, %s568_s14, %s39_s26  }
  0x2c   : > { %s154_s27 = scalar_lea.vmem [#allocation2], %s385_s24  ;;  %p704_p7 = pnand %p414_p5, %p48_p10 }
  0x2d   : > { %s164_s30 = sshll.u32 %s154_s27, 4  ;;  %s151_s26 = scalar_lea.sflag [#allocation3], %s150_s12  ;;  %s708_s30 = int_to_ptr.vmem [resolvable:$true] %s164_s30 }
  0x2e   : > { %s496_s5 = scalar_lea.hbm %s702_s23, 128  ;;  %p498_p12 = pneg %p704_p7 }
  0x2f   : > { %p497_p11 = scmp.ne.s32.totalorder %s702_s23, %s496_s5  ;;  %s501_s8 = scalar_lea.hbm %s789_s0, 256 }
  0x30   : > { %p502_p2 = scmp.lt.u32.totalorder %s702_s23, %s789_s0  ;;  %p503_p3 = scmp.lt.u32.totalorder %s501_s8, %s496_s5 }
  0x31   : > { %p499_p13 = pnand %p498_p12, %p497_p11  ;;  %p505_p9 = scmp.lt.u32.totalorder %s496_s5, %s702_s23 }
  0x32   : > { %p504_p6 = por %p503_p3, %p502_p2 }
  0x33   : > { %p500_p0 = pneg %p499_p13 }
  0x34   : > { %p506_p1 = por %p505_p9, %p504_p6 }
  0x36   : > { %p507_p4 = pnand %p506_p1, %p500_p0 }
  0x38   : > { %510 = shalt.err (!%p507_p4)
}
  0x39   : > { %s511_s11 = scalar_lea.vmem %s708_s30, 128  ;;  %s583_s12 = smov [#allocation2]  }
  0x3a   : > { %p512_p5 = scmp.ne.s32.totalorder %s708_s30, %s511_s11  ;;  %s516_s18 = sshll.u32 %s583_s12, 4  ;;  %s517_s18 = int_to_ptr.vmem [resolvable:$false] %s516_s18 }
  0x3b   : > { %s518_s24 = scalar_lea.vmem %s517_s18, 256  ;;  %p519_p11 = scmp.lt.s32.totalorder %s708_s30, %s517_s18 }
  0x3c   : > { %p514_p8 = pnand %p512_p5, %p498_p12  ;;  %p520_p13 = scmp.lt.s32.totalorder %s518_s24, %s511_s11 }
  0x3e   : > { %p515_p10 = pneg %p514_p8  ;;  %p521_p2 = por %p520_p13, %p519_p11 }
  0x40   : > { %p522_p3 = pnand %p521_p2, %p515_p10 }
  0x42   : > { %525 = shalt.err (!%p522_p3)
}
  0x43   : > { %412 = dma.hbm_to_vmem [thread:$0]  (!%p704_p7), %s702_s23, 128, %s708_s30, %s151_s26  }
  0x44   : > { %p804_p0 = scmp.ne.s32.totalorder %s799_s21, 0 }
  0x45   : > { %s175_s28 = sand.u32 (!%p804_p0), 1, %s564_s13   ;;  %p805_p12 = scmp.ne.s32.totalorder (!%p804_p0), %s798_s20, 0 }
  0x46   : > { %173 = sbr.rel (%p804_p0) target bundleno = 460 (0x1cc), region = 28  ;;  %s389_s29 = sshll.u32 (!%p804_p0), %s175_s28, 3 }
  0x47   : > { %s176_s27 = scalar_lea.sflag (!%p804_p0), [#allocation3], %s175_s28  ;;  %s179_s5 = scalar_lea.vmem (!%p804_p0), [#allocation2], %s389_s29 }
  0x4d   : > { %551 = dma.done.wait (%p805_p12), %s176_s27, 128  }
  0x4e   : > { %553 = vsyncadd (%p805_p12), %s176_s27, 4294967168  ;;  %p806_p6 = scmp.ne.s32.totalorder %s797_s19, 0 }
  0x50   : > { %555 = dma.done.wait (%p806_p6), [#allocation5], 64  }
  0x51   : > { %557 = vsyncadd (%p806_p6), [#allocation5], 4294967232  ;;  %p202_p7 = scmp.eq.s32.totalorder %s572_s15, 0 }
  0x52   : > { %vm208_vm0 = vcmask (%p202_p7), 3072   ;;  %v584_v0 = vmov (%p202_p7), 0.0  }
  0x53   : > { %207 = sbr.rel (!%p202_p7) target bundleno = 90 (0x5a), region = 40  ;;  %209 = vst.msk [vmem:[%s791_s2] sm:$0xf] (%p202_p7), %vm208_vm0, %v584_v0  ;;  %210 = vst.msk [vmem:[%s792_s3] sm:$0xf] (%p202_p7), %vm208_vm0, %v584_v0 }
  0x5a PF: > { %v212_v1 = vld [vmem:[%s179_s5] sm:$0xff]  ;;  %vm219_vm1 = vcmask 1043456   ;;  %v585_v3 = vmov 0.0   ;;  %v211_v4 = vld [vmem:[#allocation4] sm:$0xf]  ;;  %vm215_vm2 = vcmask 31744  }
  0x5b   : > { %v214_v2 = vcombine.high %v212_v1, %v212_v1  ;;  %288 = vmatprep.mubr.f32.mxu0 %v585_v3  ;;  %v295_v15 = vld [vmem:[%s791_s2] sm:$0xf]  ;;  %vm302_vm3 = vcmask 3072  }
  0x5c   : > { %v304_v18 = vld [vmem:[%s792_s3] sm:$0xf] }
  0x5d   : > { %392 = vmatprep.subr.msk.mxu0 %vm219_vm1, %v214_v2 }
  0x5e   : > { %393 = vmatpush1.msk.msra.mxu0 %vm219_vm1, %v212_v1 }
  0x5f   : > { %394 = vmatmul.mubr.msk.f32.vlgmr.msra.gmra.mrb[0].mxu0 %vm215_vm2, %v211_v4 }
 0x132   : > { %v290_v5 = vpop.f32.mrb[0].mxu0 }
 0x133   : > { %v305_v6 = vmul.f32 %v290_v5, %v290_v5  ;;  %v292_v7 = vpop.f32.mrb[1].mxu0  ;;  %v296_v8 = vsel %vm219_vm1, %v290_v5, 0.0 }
 0x134   : > { %v297_v9 = vsel %vm219_vm1, %v292_v7, 0.0  ;;  %v306_v10 = vmul.f32 %v292_v7, %v292_v7 }
 0x135   : > { %v298_v11 = vadd.f32 %v297_v9, %v296_v8  ;;  %v307_v12 = vsel %vm219_vm1, %v305_v6, 0.0 }
 0x136   : > { %v308_v13 = vsel %vm219_vm1, %v306_v10, 0.0 }
 0x137   : > { %299 = vadd.xlane.f32.xlu0 %v298_v11  ;;  %v309_v14 = vadd.f32 %v308_v13, %v307_v12 }
 0x13b   : > { %310 = vadd.xlane.f32.xlu0 %v309_v14 }
 0x1c4   : > { %v300_v16 = vpop.xlane.xlu0 %299 }
 0x1c5   : > { %v301_v17 = vadd.f32 %v300_v16, %v295_v15 }
 0x1c7   : > { %303 = vst.msk [vmem:[%s791_s2] sm:$0xf] %vm302_vm3, %v301_v17 }
 0x1c8   : > { %v311_v19 = vpop.xlane.xlu0 %310 }
 0x1c9   : > { %v312_v20 = vadd.f32 %v311_v19, %v304_v18 }
 0x1cb   : > { %313 = vst.msk [vmem:[%s792_s3] sm:$0xf] %vm302_vm3, %v312_v20 }
 0x1cc PF: > { %s18_s17 = sadd.s32 1, %s580_s17   ;;  %s807_s12 = smov %s564_s13 }
 0x1cd   : > { %p15_p9 = scmp.ge.s32.totalorder %s18_s17, 4   ;;  %s808_s13 = smov %s568_s14 }
 0x1ce   : > { %s809_s14 = smov %s697_s22  ;;  %s810_s15 = smov %s576_s16 }
 0x1cf   : > { %s811_s16 = smov %s813_s25  ;;  %17 = sbr.rel (!%p15_p9) target bundleno = 5 (0x5), region = 80 }
 0x1d6   :  { %331 = vsyncpa [#allocation3], 1 }
 0x1d7   :  { %333 = vsyncpa [#allocation3 + $0x1], 1 }
 0x1d8   :  { %334 = vsyncpa [#allocation5], 1 }

</bundles_post_ra>
